<compile_context>
chip_gen: v7x
topology: tpu7x:2x2x1
jax: 0.10.0
libtpu: 0.0.40
codegen_flags: <defaults>
</compile_context>

<pallas_src>
import functools

import numpy as np
import jax
import jax.numpy as jnp
from jax import lax
from jax.experimental import pallas as pl
from jax.experimental.pallas import tpu as pltpu

KERNEL_SIZE = 5
SIGMA = 1.0
STRIDE = 2


def gaussian_kernel1d(kernel_size=KERNEL_SIZE, sigma=SIGMA):
    # Mirrors torch: arange(-kernel_size // 2 + 1.0, kernel_size // 2 + 1.0)
    start = -kernel_size // 2 + 1.0
    stop = kernel_size // 2 + 1.0
    x = np.arange(start, stop, dtype=np.float32)
    g = np.exp(-(x ** 2) / (2.0 * sigma ** 2))
    return (g / g.sum()).astype(np.float32)     # outer(g, g) == normalized 2-D kernel


def gaussian_kernel2d(kernel_size=KERNEL_SIZE, sigma=SIGMA):
    g = gaussian_kernel1d(kernel_size, sigma)
    return np.outer(g, g).astype(np.float32)    # (K, K)


def _round_up(v, m):
    return (v + m - 1) // m * m


def _blur_kernel(main_ref, halo_ref, out_ref, *, g0, g1, g2, th, P):
    # main_ref: (1, 4, th, we)  2x2 polyphase planes of this tile's padded rows
    #           plane 0: (even row, even col)   plane 1: (even row, odd col)
    #           plane 2: (odd  row, even col)   plane 3: (odd  row, odd col)
    # halo_ref: (1, 4, 8, we)   next 8 polyphase rows (only the first 1-2 are used)
    # out_ref : (1, th, P)      P = wo_pad (128-aligned)
    blk = main_ref[...].astype(jnp.float32)
    hal = halo_ref[...].astype(jnp.float32)
    ee, eo, oe, oo = blk[0, 0], blk[0, 1], blk[0, 2], blk[0, 3]        # (th, we)
    hee, heo, hoe, hoo = hal[0, 0], hal[0, 1], hal[0, 2], hal[0, 3]    # (8, we)

    def hblur(e_cols, o_cols):
        # 5-tap horizontal blur with stride 2 on pre-split column phases
        # (symmetric taps: g4==g0, g3==g1):
        #   h[r, j] = g0*(x[r,2j] + x[r,2j+4]) + g1*(x[r,2j+1] + x[r,2j+3]) + g2*x[r,2j+2]
        return (g0 * (e_cols[:, 0:P] + e_cols[:, 2:P + 2])
                + g1 * (o_cols[:, 0:P] + o_cols[:, 1:P + 1])
                + g2 * e_cols[:, 1:P + 1])

    t_e = hblur(ee, eo)                  # (th, P)  h-blurred even padded rows
    t_o = hblur(oe, oo)                  # (th, P)  h-blurred odd padded rows
    t_eh = hblur(hee[0:2], heo[0:2])     # (2, P)   next two even padded rows (halo)
    t_oh = hblur(hoe[0:1], hoo[0:1])     # (1, P)   next odd padded row (halo)

    # Vertical 5-tap blur with stride 2 (symmetric taps):
    #   out[i] = g0*(t_e[i] + t_e[i+2]) + g1*(t_o[i] + t_o[i+1]) + g2*t_e[i+1]
    # Rows [0, th-2) only touch this tile's rows; the last two rows need the halo
    # and are handled in a small epilogue (no concatenation of big temporaries).
    bulk = (g0 * (t_e[0:th - 2] + t_e[2:th])
            + g1 * (t_o[0:th - 2] + t_o[1:th - 1])
            + g2 * t_e[1:th - 1])
    row_m2 = (g0 * (t_e[th - 2:th - 1] + t_eh[0:1])
              + g1 * (t_o[th - 2:th - 1] + t_o[th - 1:th])
              + g2 * t_e[th - 1:th])
    row_m1 = (g0 * (t_e[th - 1:th] + t_eh[1:2])
              + g1 * (t_o[th - 1:th] + t_oh[0:1])
              + g2 * t_eh[0:1])

    out_ref[:, 0:th - 2, :] = bulk[None].astype(out_ref.dtype)
    out_ref[:, th - 2:th - 1, :] = row_m2[None].astype(out_ref.dtype)
    out_ref[:, th - 1:th, :] = row_m1[None].astype(out_ref.dtype)


def _pick_row_tile(ho, we, wo_pad, itemsize, row_tile_max, budget_bytes=20 << 20):
    """Largest multiple-of-8 output-row tile whose per-step footprint fits the budget."""
    th = min(_round_up(ho, 8), _round_up(row_tile_max, 8))

    def step_bytes(t):
        # double-buffered DMA blocks + single-buffered f32 intermediates
        blocks = 2 * (4 * t * we + 4 * 8 * we + t * wo_pad) * itemsize
        temps = 4 * t * we * 4 + (3 * t + 3) * wo_pad * 4
        return blocks + temps

    while th > 8 and step_bytes(th) > budget_bytes:
        th -= 8
    return max(th, 8)


def gaussian_blur2d(x, kernel_size=KERNEL_SIZE, sigma=SIGMA, stride=STRIDE,
                    row_tile=512):
    n, c, h, w = x.shape
    assert c == 1, "F.conv2d with weight (1,1,K,K) requires a single input channel"
    assert kernel_size == 5 and stride == 2, "kernel specialized to K=5, stride=2"
    pad = kernel_size // 2
    ho = (h + 2 * pad - kernel_size) // stride + 1
    wo = (w + 2 * pad - kernel_size) // stride + 1

    g = gaussian_kernel1d(kernel_size, sigma)
    g0, g1, g2 = float(g[0]), float(g[1]), float(g[2])   # g[3]==g[1], g[4]==g[0]

    itemsize = jnp.dtype(x.dtype).itemsize
    wo_pad = _round_up(wo, 128)     # lane-dense output width (excess sliced off below)
    we = wo_pad + 128               # 128-aligned phase-plane width, >= wo_pad + 2

    th = _pick_row_tile(ho, we, wo_pad, itemsize, row_tile)
    # Ensure >= 2 grid steps so both v7x TensorCores get work (no-op on v5e/v6e).
    if n * ((ho + th - 1) // th) < 2 and ho > 8:
        th = max(8, _round_up((ho + 1) // 2, 8))
    nt = pl.cdiv(ho, th)
    ho_pad = nt * th
    hh = ho_pad + 8                 # phase-plane height (+8-row halo block at the end)

    # Single fused pre-pass: zero-pad + 2x2 polyphase split.  XLA fuses pad+slice+stack
    # into one copy of input-sized data (same HBM traffic as a plain zero-pad).
    x2 = x[:, 0]                                                    # (n, h, w)
    xpad = jnp.pad(x2, ((0, 0), (pad, 2 * hh - pad - h), (pad, 2 * we - pad - w)))
    phases = jnp.stack([xpad[:, 0::2, 0::2], xpad[:, 0::2, 1::2],
                        xpad[:, 1::2, 0::2], xpad[:, 1::2, 1::2]], axis=1)
    # phases: (n, 4, hh, we), dtype preserved

    kernel_fn = functools.partial(_blur_kernel, g0=g0, g1=g1, g2=g2, th=th, P=wo_pad)

    out = pl.pallas_call(
        kernel_fn,
        out_shape=jax.ShapeDtypeStruct((n, ho_pad, wo_pad), x.dtype),
        grid=(n, nt),
        in_specs=[
            # main rows of the tile: phase-plane rows [t*th, (t+1)*th)
            pl.BlockSpec((1, 4, th, we), lambda i, t: (i, 0, t, 0)),
            # 8-row bottom halo: phase-plane rows [(t+1)*th, (t+1)*th + 8)
            pl.BlockSpec((1, 4, 8, we), lambda i, t: (i, 0, (t + 1) * (th // 8), 0)),
        ],
        out_specs=pl.BlockSpec((1, th, wo_pad), lambda i, t: (i, t, 0)),
        compiler_params=pltpu.CompilerParams(
            dimension_semantics=("parallel", "parallel"),
            vmem_limit_bytes=48 * 1024 * 1024),
    )(phases, phases)

    return out[:, None, :ho, :wo]   # back to NCHW, drop alignment padding


def _reference(x, kernel_size=KERNEL_SIZE, sigma=SIGMA, stride=STRIDE):
    pad = kernel_size // 2
    kern = jnp.asarray(gaussian_kernel2d(kernel_size, sigma))[None, None]
    return lax.conv_general_dilated(
        x.astype(jnp.float32), kern,
        window_strides=(stride, stride),
        padding=[(pad, pad), (pad, pad)],
        dimension_numbers=("NCHW", "OIHW", "NCHW"),
    )


if __name__ == "__main__":
    key = jax.random.PRNGKey(0)
    x = jax.random.normal(key, (2, 1, 16, 16), dtype=jnp.float32)

    y = jax.block_until_ready(jax.jit(gaussian_blur2d)(x))
    y_ref = jax.block_until_ready(_reference(x))

    assert y.shape == (2, 1, 8, 8), y.shape
    np.testing.assert_allclose(np.asarray(y), np.asarray(y_ref), rtol=1e-5, atol=1e-5)
    print("KERNEL_OK")
</pallas_src>

<mosaic_0001>
module attributes {stable_mosaic.version = 11 : i64} {
  func.func @_blur_kernel(%arg0: i32, %arg1: i32, %arg2: memref<1x4x8x256xf32, #tpu.memory_space<vmem>>, %arg3: memref<1x4x8x256xf32, #tpu.memory_space<vmem>>, %arg4: memref<1x8x128xf32, #tpu.memory_space<vmem>>) attributes {dimension_semantics = [#tpu.dimension_semantics<parallel>, #tpu.dimension_semantics<parallel>], iteration_bounds = array<i64: 2, 1>, scalar_prefetch = 0 : i64, scratch_operands = 0 : i64, tpu.core_type = #tpu.core_type<tc>, window_params = [{transform_indices = @transform_0, window_bounds = array<i64: 1, 4, 8, 256>}, {transform_indices = @transform_1, window_bounds = array<i64: 1, 4, 8, 256>}, {transform_indices = @transform_2, window_bounds = array<i64: 1, 8, 128>}]} {
    %c0 = arith.constant 0 : index
    %c0_0 = arith.constant 0 : index
    %c0_1 = arith.constant 0 : index
    %c0_2 = arith.constant 0 : index
    %0 = vector.load %arg2[%c0, %c0_0, %c0_1, %c0_2] : memref<1x4x8x256xf32, #tpu.memory_space<vmem>>, vector<1x4x8x256xf32>
    %c0_3 = arith.constant 0 : index
    %c0_4 = arith.constant 0 : index
    %c0_5 = arith.constant 0 : index
    %c0_6 = arith.constant 0 : index
    %1 = vector.load %arg3[%c0_3, %c0_4, %c0_5, %c0_6] : memref<1x4x8x256xf32, #tpu.memory_space<vmem>>, vector<1x4x8x256xf32>
    %2 = vector.extract_strided_slice %0 {offsets = [0, 0, 0, 0], sizes = [1, 1, 8, 256], strides = [1, 1, 1, 1]} : vector<1x4x8x256xf32> to vector<1x1x8x256xf32>
    %3 = vector.shape_cast %2 : vector<1x1x8x256xf32> to vector<8x256xf32>
    %4 = vector.extract_strided_slice %0 {offsets = [0, 1, 0, 0], sizes = [1, 1, 8, 256], strides = [1, 1, 1, 1]} : vector<1x4x8x256xf32> to vector<1x1x8x256xf32>
    %5 = vector.shape_cast %4 : vector<1x1x8x256xf32> to vector<8x256xf32>
    %6 = vector.extract_strided_slice %0 {offsets = [0, 2, 0, 0], sizes = [1, 1, 8, 256], strides = [1, 1, 1, 1]} : vector<1x4x8x256xf32> to vector<1x1x8x256xf32>
    %7 = vector.shape_cast %6 : vector<1x1x8x256xf32> to vector<8x256xf32>
    %8 = vector.extract_strided_slice %0 {offsets = [0, 3, 0, 0], sizes = [1, 1, 8, 256], strides = [1, 1, 1, 1]} : vector<1x4x8x256xf32> to vector<1x1x8x256xf32>
    %9 = vector.shape_cast %8 : vector<1x1x8x256xf32> to vector<8x256xf32>
    %10 = vector.extract_strided_slice %1 {offsets = [0, 0, 0, 0], sizes = [1, 1, 8, 256], strides = [1, 1, 1, 1]} : vector<1x4x8x256xf32> to vector<1x1x8x256xf32>
    %11 = vector.shape_cast %10 : vector<1x1x8x256xf32> to vector<8x256xf32>
    %12 = vector.extract_strided_slice %1 {offsets = [0, 1, 0, 0], sizes = [1, 1, 8, 256], strides = [1, 1, 1, 1]} : vector<1x4x8x256xf32> to vector<1x1x8x256xf32>
    %13 = vector.shape_cast %12 : vector<1x1x8x256xf32> to vector<8x256xf32>
    %14 = vector.extract_strided_slice %1 {offsets = [0, 2, 0, 0], sizes = [1, 1, 8, 256], strides = [1, 1, 1, 1]} : vector<1x4x8x256xf32> to vector<1x1x8x256xf32>
    %15 = vector.shape_cast %14 : vector<1x1x8x256xf32> to vector<8x256xf32>
    %16 = vector.extract_strided_slice %1 {offsets = [0, 3, 0, 0], sizes = [1, 1, 8, 256], strides = [1, 1, 1, 1]} : vector<1x4x8x256xf32> to vector<1x1x8x256xf32>
    %17 = vector.shape_cast %16 : vector<1x1x8x256xf32> to vector<8x256xf32>
    %18 = vector.extract_strided_slice %3 {offsets = [0, 0], sizes = [8, 128], strides = [1, 1]} : vector<8x256xf32> to vector<8x128xf32>
    %19 = vector.extract_strided_slice %3 {offsets = [0, 2], sizes = [8, 128], strides = [1, 1]} : vector<8x256xf32> to vector<8x128xf32>
    %20 = arith.addf %18, %19 : vector<8x128xf32>
    %cst = arith.constant 0.0544886887 : f32
    %21 = vector.broadcast %cst : f32 to vector<8x128xf32>
    %22 = arith.mulf %21, %20 : vector<8x128xf32>
    %23 = vector.extract_strided_slice %5 {offsets = [0, 0], sizes = [8, 128], strides = [1, 1]} : vector<8x256xf32> to vector<8x128xf32>
    %24 = vector.extract_strided_slice %5 {offsets = [0, 1], sizes = [8, 128], strides = [1, 1]} : vector<8x256xf32> to vector<8x128xf32>
    %25 = arith.addf %23, %24 : vector<8x128xf32>
    %cst_7 = arith.constant 0.244201362 : f32
    %26 = vector.broadcast %cst_7 : f32 to vector<8x128xf32>
    %27 = arith.mulf %26, %25 : vector<8x128xf32>
    %28 = arith.addf %22, %27 : vector<8x128xf32>
    %29 = vector.extract_strided_slice %3 {offsets = [0, 1], sizes = [8, 128], strides = [1, 1]} : vector<8x256xf32> to vector<8x128xf32>
    %cst_8 = arith.constant 0.402619958 : f32
    %30 = vector.broadcast %cst_8 : f32 to vector<8x128xf32>
    %31 = arith.mulf %30, %29 : vector<8x128xf32>
    %32 = arith.addf %28, %31 : vector<8x128xf32>
    %33 = vector.extract_strided_slice %7 {offsets = [0, 0], sizes = [8, 128], strides = [1, 1]} : vector<8x256xf32> to vector<8x128xf32>
    %34 = vector.extract_strided_slice %7 {offsets = [0, 2], sizes = [8, 128], strides = [1, 1]} : vector<8x256xf32> to vector<8x128xf32>
    %35 = arith.addf %33, %34 : vector<8x128xf32>
    %cst_9 = arith.constant 0.0544886887 : f32
    %36 = vector.broadcast %cst_9 : f32 to vector<8x128xf32>
    %37 = arith.mulf %36, %35 : vector<8x128xf32>
    %38 = vector.extract_strided_slice %9 {offsets = [0, 0], sizes = [8, 128], strides = [1, 1]} : vector<8x256xf32> to vector<8x128xf32>
    %39 = vector.extract_strided_slice %9 {offsets = [0, 1], sizes = [8, 128], strides = [1, 1]} : vector<8x256xf32> to vector<8x128xf32>
    %40 = arith.addf %38, %39 : vector<8x128xf32>
    %cst_10 = arith.constant 0.244201362 : f32
    %41 = vector.broadcast %cst_10 : f32 to vector<8x128xf32>
    %42 = arith.mulf %41, %40 : vector<8x128xf32>
    %43 = arith.addf %37, %42 : vector<8x128xf32>
    %44 = vector.extract_strided_slice %7 {offsets = [0, 1], sizes = [8, 128], strides = [1, 1]} : vector<8x256xf32> to vector<8x128xf32>
    %cst_11 = arith.constant 0.402619958 : f32
    %45 = vector.broadcast %cst_11 : f32 to vector<8x128xf32>
    %46 = arith.mulf %45, %44 : vector<8x128xf32>
    %47 = arith.addf %43, %46 : vector<8x128xf32>
    %48 = vector.extract_strided_slice %11 {offsets = [0, 0], sizes = [2, 256], strides = [1, 1]} : vector<8x256xf32> to vector<2x256xf32>
    %49 = vector.extract_strided_slice %13 {offsets = [0, 0], sizes = [2, 256], strides = [1, 1]} : vector<8x256xf32> to vector<2x256xf32>
    %50 = vector.extract_strided_slice %48 {offsets = [0, 0], sizes = [2, 128], strides = [1, 1]} : vector<2x256xf32> to vector<2x128xf32>
    %51 = vector.extract_strided_slice %48 {offsets = [0, 2], sizes = [2, 128], strides = [1, 1]} : vector<2x256xf32> to vector<2x128xf32>
    %52 = arith.addf %50, %51 : vector<2x128xf32>
    %cst_12 = arith.constant 0.0544886887 : f32
    %53 = vector.broadcast %cst_12 : f32 to vector<2x128xf32>
    %54 = arith.mulf %53, %52 : vector<2x128xf32>
    %55 = vector.extract_strided_slice %49 {offsets = [0, 0], sizes = [2, 128], strides = [1, 1]} : vector<2x256xf32> to vector<2x128xf32>
    %56 = vector.extract_strided_slice %49 {offsets = [0, 1], sizes = [2, 128], strides = [1, 1]} : vector<2x256xf32> to vector<2x128xf32>
    %57 = arith.addf %55, %56 : vector<2x128xf32>
    %cst_13 = arith.constant 0.244201362 : f32
    %58 = vector.broadcast %cst_13 : f32 to vector<2x128xf32>
    %59 = arith.mulf %58, %57 : vector<2x128xf32>
    %60 = arith.addf %54, %59 : vector<2x128xf32>
    %61 = vector.extract_strided_slice %48 {offsets = [0, 1], sizes = [2, 128], strides = [1, 1]} : vector<2x256xf32> to vector<2x128xf32>
    %cst_14 = arith.constant 0.402619958 : f32
    %62 = vector.broadcast %cst_14 : f32 to vector<2x128xf32>
    %63 = arith.mulf %62, %61 : vector<2x128xf32>
    %64 = arith.addf %60, %63 : vector<2x128xf32>
    %65 = vector.extract_strided_slice %15 {offsets = [0, 0], sizes = [1, 256], strides = [1, 1]} : vector<8x256xf32> to vector<1x256xf32>
    %66 = vector.extract_strided_slice %17 {offsets = [0, 0], sizes = [1, 256], strides = [1, 1]} : vector<8x256xf32> to vector<1x256xf32>
    %67 = vector.extract_strided_slice %65 {offsets = [0, 0], sizes = [1, 128], strides = [1, 1]} : vector<1x256xf32> to vector<1x128xf32>
    %68 = vector.extract_strided_slice %65 {offsets = [0, 2], sizes = [1, 128], strides = [1, 1]} : vector<1x256xf32> to vector<1x128xf32>
    %69 = arith.addf %67, %68 : vector<1x128xf32>
    %cst_15 = arith.constant 0.0544886887 : f32
    %70 = vector.broadcast %cst_15 : f32 to vector<1x128xf32>
    %71 = arith.mulf %70, %69 : vector<1x128xf32>
    %72 = vector.extract_strided_slice %66 {offsets = [0, 0], sizes = [1, 128], strides = [1, 1]} : vector<1x256xf32> to vector<1x128xf32>
    %73 = vector.extract_strided_slice %66 {offsets = [0, 1], sizes = [1, 128], strides = [1, 1]} : vector<1x256xf32> to vector<1x128xf32>
    %74 = arith.addf %72, %73 : vector<1x128xf32>
    %cst_16 = arith.constant 0.244201362 : f32
    %75 = vector.broadcast %cst_16 : f32 to vector<1x128xf32>
    %76 = arith.mulf %75, %74 : vector<1x128xf32>
    %77 = arith.addf %71, %76 : vector<1x128xf32>
    %78 = vector.extract_strided_slice %65 {offsets = [0, 1], sizes = [1, 128], strides = [1, 1]} : vector<1x256xf32> to vector<1x128xf32>
    %cst_17 = arith.constant 0.402619958 : f32
    %79 = vector.broadcast %cst_17 : f32 to vector<1x128xf32>
    %80 = arith.mulf %79, %78 : vector<1x128xf32>
    %81 = arith.addf %77, %80 : vector<1x128xf32>
    %82 = vector.extract_strided_slice %32 {offsets = [0, 0], sizes = [6, 128], strides = [1, 1]} : vector<8x128xf32> to vector<6x128xf32>
    %83 = vector.extract_strided_slice %32 {offsets = [2, 0], sizes = [6, 128], strides = [1, 1]} : vector<8x128xf32> to vector<6x128xf32>
    %84 = arith.addf %82, %83 : vector<6x128xf32>
    %cst_18 = arith.constant 0.0544886887 : f32
    %85 = vector.broadcast %cst_18 : f32 to vector<6x128xf32>
    %86 = arith.mulf %85, %84 : vector<6x128xf32>
    %87 = vector.extract_strided_slice %47 {offsets = [0, 0], sizes = [6, 128], strides = [1, 1]} : vector<8x128xf32> to vector<6x128xf32>
    %88 = vector.extract_strided_slice %47 {offsets = [1, 0], sizes = [6, 128], strides = [1, 1]} : vector<8x128xf32> to vector<6x128xf32>
    %89 = arith.addf %87, %88 : vector<6x128xf32>
    %cst_19 = arith.constant 0.244201362 : f32
    %90 = vector.broadcast %cst_19 : f32 to vector<6x128xf32>
    %91 = arith.mulf %90, %89 : vector<6x128xf32>
    %92 = arith.addf %86, %91 : vector<6x128xf32>
    %93 = vector.extract_strided_slice %32 {offsets = [1, 0], sizes = [6, 128], strides = [1, 1]} : vector<8x128xf32> to vector<6x128xf32>
    %cst_20 = arith.constant 0.402619958 : f32
    %94 = vector.broadcast %cst_20 : f32 to vector<6x128xf32>
    %95 = arith.mulf %94, %93 : vector<6x128xf32>
    %96 = arith.addf %92, %95 : vector<6x128xf32>
    %97 = vector.extract_strided_slice %32 {offsets = [6, 0], sizes = [1, 128], strides = [1, 1]} : vector<8x128xf32> to vector<1x128xf32>
    %98 = vector.extract_strided_slice %64 {offsets = [0, 0], sizes = [1, 128], strides = [1, 1]} : vector<2x128xf32> to vector<1x128xf32>
    %99 = arith.addf %97, %98 : vector<1x128xf32>
    %cst_21 = arith.constant 0.0544886887 : f32
    %100 = vector.broadcast %cst_21 : f32 to vector<1x128xf32>
    %101 = arith.mulf %100, %99 : vector<1x128xf32>
    %102 = vector.extract_strided_slice %47 {offsets = [6, 0], sizes = [1, 128], strides = [1, 1]} : vector<8x128xf32> to vector<1x128xf32>
    %103 = vector.extract_strided_slice %47 {offsets = [7, 0], sizes = [1, 128], strides = [1, 1]} : vector<8x128xf32> to vector<1x128xf32>
    %104 = arith.addf %102, %103 : vector<1x128xf32>
    %cst_22 = arith.constant 0.244201362 : f32
    %105 = vector.broadcast %cst_22 : f32 to vector<1x128xf32>
    %106 = arith.mulf %105, %104 : vector<1x128xf32>
    %107 = arith.addf %101, %106 : vector<1x128xf32>
    %108 = vector.extract_strided_slice %32 {offsets = [7, 0], sizes = [1, 128], strides = [1, 1]} : vector<8x128xf32> to vector<1x128xf32>
    %cst_23 = arith.constant 0.402619958 : f32
    %109 = vector.broadcast %cst_23 : f32 to vector<1x128xf32>
    %110 = arith.mulf %109, %108 : vector<1x128xf32>
    %111 = arith.addf %107, %110 : vector<1x128xf32>
    %112 = vector.extract_strided_slice %32 {offsets = [7, 0], sizes = [1, 128], strides = [1, 1]} : vector<8x128xf32> to vector<1x128xf32>
    %113 = vector.extract_strided_slice %64 {offsets = [1, 0], sizes = [1, 128], strides = [1, 1]} : vector<2x128xf32> to vector<1x128xf32>
    %114 = arith.addf %112, %113 : vector<1x128xf32>
    %cst_24 = arith.constant 0.0544886887 : f32
    %115 = vector.broadcast %cst_24 : f32 to vector<1x128xf32>
    %116 = arith.mulf %115, %114 : vector<1x128xf32>
    %117 = vector.extract_strided_slice %47 {offsets = [7, 0], sizes = [1, 128], strides = [1, 1]} : vector<8x128xf32> to vector<1x128xf32>
    %118 = arith.addf %117, %81 : vector<1x128xf32>
    %cst_25 = arith.constant 0.244201362 : f32
    %119 = vector.broadcast %cst_25 : f32 to vector<1x128xf32>
    %120 = arith.mulf %119, %118 : vector<1x128xf32>
    %121 = arith.addf %116, %120 : vector<1x128xf32>
    %122 = vector.extract_strided_slice %64 {offsets = [0, 0], sizes = [1, 128], strides = [1, 1]} : vector<2x128xf32> to vector<1x128xf32>
    %cst_26 = arith.constant 0.402619958 : f32
    %123 = vector.broadcast %cst_26 : f32 to vector<1x128xf32>
    %124 = arith.mulf %123, %122 : vector<1x128xf32>
    %125 = arith.addf %121, %124 : vector<1x128xf32>
    %126 = vector.shape_cast %96 : vector<6x128xf32> to vector<1x6x128xf32>
    %c0_27 = arith.constant 0 : index
    %c0_28 = arith.constant 0 : index
    %c0_29 = arith.constant 0 : index
    %127 = vector.load %arg4[%c0_27, %c0_28, %c0_29] : memref<1x8x128xf32, #tpu.memory_space<vmem>>, vector<1x6x128xf32>
    tpu.vector_store %arg4[%c0_27, %c0_28, %c0_29], %126 {strides = array<i32>} : memref<1x8x128xf32, #tpu.memory_space<vmem>>, vector<1x6x128xf32>,
    %128 = vector.shape_cast %111 : vector<1x128xf32> to vector<1x1x128xf32>
    %c0_30 = arith.constant 0 : index
    %c6 = arith.constant 6 : index
    %c0_31 = arith.constant 0 : index
    %129 = vector.load %arg4[%c0_30, %c6, %c0_31] : memref<1x8x128xf32, #tpu.memory_space<vmem>>, vector<1x1x128xf32>
    tpu.vector_store %arg4[%c0_30, %c6, %c0_31], %128 {strides = array<i32>} : memref<1x8x128xf32, #tpu.memory_space<vmem>>, vector<1x1x128xf32>,
    %130 = vector.shape_cast %125 : vector<1x128xf32> to vector<1x1x128xf32>
    %c0_32 = arith.constant 0 : index
    %c7 = arith.constant 7 : index
    %c0_33 = arith.constant 0 : index
    %131 = vector.load %arg4[%c0_32, %c7, %c0_33] : memref<1x8x128xf32, #tpu.memory_space<vmem>>, vector<1x1x128xf32>
    tpu.vector_store %arg4[%c0_32, %c7, %c0_33], %130 {strides = array<i32>} : memref<1x8x128xf32, #tpu.memory_space<vmem>>, vector<1x1x128xf32>,
    return
  }
  func.func @transform_0(%arg0: i32, %arg1: i32) -> (i32, i32, i32, i32) {
    %c0_i32 = arith.constant 0 : i32
    %c0_i32_0 = arith.constant 0 : i32
    %c0_i32_1 = arith.constant 0 : i32
    return %arg0, %c0_i32, %arg1, %c0_i32_0 : i32, i32, i32, i32
  }
  func.func @transform_1(%arg0: i32, %arg1: i32) -> (i32, i32, i32, i32) {
    %c1_i32 = arith.constant 1 : i32
    %0 = arith.addi %arg1, %c1_i32 : i32
    %c1_i32_0 = arith.constant 1 : i32
    %1 = arith.muli %0, %c1_i32_0 : i32
    %c0_i32 = arith.constant 0 : i32
    %c0_i32_1 = arith.constant 0 : i32
    %c0_i32_2 = arith.constant 0 : i32
    return %arg0, %c0_i32, %1, %c0_i32_1 : i32, i32, i32, i32
  }
  func.func @transform_2(%arg0: i32, %arg1: i32) -> (i32, i32, i32) {
    %c0_i32 = arith.constant 0 : i32
    %c0_i32_0 = arith.constant 0 : i32
    return %arg0, %arg1, %c0_i32 : i32, i32, i32
  }
}

</mosaic_0001>

<bundles_post_ra>
// kernel: gaussian_blur2d.1
= control target key start
LH: loop header
LB: loop body
LE: loop exit
PB: predicated region body
PF: predicated region fallthrough
CT: control target
= control target key end

     0   :  { %s672_s9 = smov 0   ;;  %s674_s10 = smov 0   ;;  %s803_s0 = inlined_call_operand.vmem [shape: f32[2,4,16,256], index: 0, kind: input, shape index: {}, may-alias: {0,1}]   ;;  %s804_s1 = inlined_call_operand.vmem [shape: f32[2,4,16,256], index: 1, kind: input, shape index: {}, may-alias: {0,1}]   ;;  %s805_s2 = inlined_call_operand.vmem [shape: f32[2,8,128], index: 2, kind: output, shape index: {}]  }
   0x1   :  { %s676_s11 = smov 0   ;;  %s678_s12 = smov 0  }
   0x2   :  { %s680_s13 = smov 0  }
   0x3 LB: > { %s24_s14 = sadd.s32 1, %s649_s12  ;;  %p40_p1 = scmp.ne.s32.totalorder %s641_s10, %s637_s9  ;;  %s653_s13 = sphi %s680_s13, %s12_s13   ;;  %s649_s12 = sphi %s678_s12, %s810_s12   ;;  %s645_s11 = sphi %s676_s11, %s809_s11   ;;  %s641_s10 = sphi %s674_s10, %s808_s10   ;;  %s637_s9 = sphi %s672_s9, %s807_s9  }
   0x4   : > { %p26_p0 = scmp.ge.s32.totalorder %s24_s14, 2  ;;  %p41_p2 = scmp.eq.s32.totalorder %s653_s13, 0 }
   0x5   : > { %s33_s17 = sadd.s32 1, %s641_s10  ;;  %p550_p5 = scmp.ge.s32.totalorder %s653_s13, 2 }
   0x6   : > { %s812_s14 = smov (%p26_p0, %s24_s14), 0  ;;  %p703_p3 = por %p41_p2, %p40_p1 }
   0x7   : > { %s28_s16 = ssub.s32 %s649_s12, %s812_s14  ;;  %124 = sbr.rel (%p550_p5) target bundleno = 30 (0x1e), region = 16 }
   0x8   : > { %p31_p4 = scmp.eq.s32.totalorder %s28_s16, 0 }
   0xa   : > { %s711_s18 = scalar_select %p31_p4, %s641_s10, %s33_s17  }
   0xe   : > { %127 = sbr.rel (!%p703_p3) target bundleno = 22 (0x16), region = 20  ;;  %s129_s19 = sand.u32 (%p703_p3), 1, %s641_s10  }
   0xf   : > { %s571_s20 = sshll.u32 (%p703_p3), %s649_s12, 7  ;;  %s551_s21 = sshll.u32 (%p703_p3), %s129_s19, 6 }
  0x10   : > { %s136_s24 = scalar_lea.vmem (%p703_p3), %s803_s0, %s571_s20  ;;  %s131_s25 = scalar_lea.vmem (%p703_p3), [#allocation2], %s551_s21 }
  0x11   : > { %v149_v0 = vld [vmem:[%s136_s24] sm:$0xff] (%p703_p3)  ;;  %v151_v1 = vld [vmem:[%s136_s24 + $0x8] sm:$0xff] (%p703_p3) }
  0x12   : > { %v153_v2 = vld [vmem:[%s136_s24 + $0x20] sm:$0xff] (%p703_p3)  ;;  %150 = vst [vmem:[%s131_s25] sm:$0xff] (%p703_p3), %v149_v0  ;;  %152 = vst [vmem:[%s131_s25 + $0x8] sm:$0xff] (%p703_p3), %v151_v1  ;;  %v155_v3 = vld [vmem:[%s136_s24 + $0x28] sm:$0xff] (%p703_p3) }
  0x13   : > { %154 = vst [vmem:[%s131_s25 + $0x10] sm:$0xff] (%p703_p3), %v153_v2  ;;  %v157_v4 = vld [vmem:[%s136_s24 + $0x40] sm:$0xff] (%p703_p3)  ;;  %v159_v5 = vld [vmem:[%s136_s24 + $0x48] sm:$0xff] (%p703_p3)  ;;  %156 = vst [vmem:[%s131_s25 + $0x18] sm:$0xff] (%p703_p3), %v155_v3 }
  0x14   : > { %158 = vst [vmem:[%s131_s25 + $0x20] sm:$0xff] (%p703_p3), %v157_v4  ;;  %160 = vst [vmem:[%s131_s25 + $0x28] sm:$0xff] (%p703_p3), %v159_v5  ;;  %v161_v6 = vld [vmem:[%s136_s24 + $0x60] sm:$0xff] (%p703_p3)  ;;  %v163_v7 = vld [vmem:[%s136_s24 + $0x68] sm:$0xff] (%p703_p3) }
  0x15   : > { %162 = vst [vmem:[%s131_s25 + $0x30] sm:$0xff] %v161_v6  ;;  %164 = vst [vmem:[%s131_s25 + $0x38] sm:$0xff] %v163_v7 }
  0x16 PF: > { %170 = sbr.rel (!%p703_p3) target bundleno = 30 (0x1e), region = 43  ;;  %s172_s26 = sand.u32 (%p703_p3), 1, %s641_s10  }
  0x17   : > { %s572_s27 = sshll.u32 (%p703_p3), %s649_s12, 7  ;;  %s554_s28 = sshll.u32 (%p703_p3), %s172_s26, 6 }
  0x18   : > { %s483_s3 = scalar_lea.vmem (%p703_p3), %s804_s1, %s572_s27  ;;  %s174_s4 = scalar_lea.vmem (%p703_p3), [#allocation3], %s554_s28 }
  0x19   : > { %v557_v8 = vld [vmem:[%s483_s3 + $0x10] sm:$0xff] (%p703_p3)  ;;  %v558_v9 = vld [vmem:[%s483_s3 + $0x18] sm:$0xff] (%p703_p3) }
  0x1a   : > { %v559_v10 = vld [vmem:[%s483_s3 + $0x30] sm:$0xff] (%p703_p3)  ;;  %194 = vst [vmem:[%s174_s4] sm:$0xff] (%p703_p3), %v557_v8  ;;  %196 = vst [vmem:[%s174_s4 + $0x8] sm:$0xff] (%p703_p3), %v558_v9  ;;  %v560_v11 = vld [vmem:[%s483_s3 + $0x38] sm:$0xff] (%p703_p3) }
  0x1b   : > { %198 = vst [vmem:[%s174_s4 + $0x10] sm:$0xff] (%p703_p3), %v559_v10  ;;  %v561_v12 = vld [vmem:[%s483_s3 + $0x50] sm:$0xff] (%p703_p3)  ;;  %v562_v13 = vld [vmem:[%s483_s3 + $0x58] sm:$0xff] (%p703_p3)  ;;  %200 = vst [vmem:[%s174_s4 + $0x18] sm:$0xff] (%p703_p3), %v560_v11 }
  0x1c   : > { %202 = vst [vmem:[%s174_s4 + $0x20] sm:$0xff] (%p703_p3), %v561_v12  ;;  %204 = vst [vmem:[%s174_s4 + $0x28] sm:$0xff] (%p703_p3), %v562_v13  ;;  %v563_v14 = vld [vmem:[%s483_s3 + $0x70] sm:$0xff] (%p703_p3)  ;;  %v564_v15 = vld [vmem:[%s483_s3 + $0x78] sm:$0xff] (%p703_p3) }
  0x1d   : > { %206 = vst [vmem:[%s174_s4 + $0x30] sm:$0xff] %v563_v14  ;;  %208 = vst [vmem:[%s174_s4 + $0x38] sm:$0xff] %v564_v15 }
  0x1e PF: > { %p565_p6 = scmp.ge.s32.totalorder %s653_s13, 1  ;;  %p213_p7 = scmp.lt.s32.totalorder %s653_s13, 3 }
  0x20   : > { %p214_p8 = pnand %p565_p6, %p213_p7 }
  0x21   : > { %s220_s5 = sand.u32 (!%p214_p8), 1, %s637_s9   ;;  %s655_s8 = smov (!%p214_p8), 127   ;;  %vm295_vm0 = vcmask (!%p214_p8), 1039360   ;;  %vm284_vm1 = vcmask (!%p214_p8), 1031168  }
  0x22   : > { %217 = sbr.rel (%p214_p8) target bundleno = 210 (0xd2), region = 66  ;;  %s566_s6 = sshll.u32 (!%p214_p8), %s220_s5, 6 }
  0x23   : > { %s222_s7 = scalar_lea.vmem (!%p214_p8), [#allocation2], %s566_s6  ;;  %s656_s15 = smov (!%p214_p8), 126  }
  0x24   : > { %v731_v16 = vld [vmem:[%s222_s7 + $0x10] sm:$0xff] (!%p214_p8)  ;;  %v733_v17 = vld [vmem:[%s222_s7] sm:$0xff] (!%p214_p8)  ;;  %v265_v18 = vld [vmem:[%s222_s7 + $0x18] sm:$0xff] (!%p214_p8)  ;;  %s229_s9 = scalar_lea.vmem (!%p214_p8), [#allocation3], %s566_s6  ;;  %p255_p9 = scmp.lt.s32.totalorder (!%p214_p8), %s645_s11, 1 }
  0x25   : > { %291 = vrot.lane.b32.xlu1 (!%p214_p8), %v731_v16, %s655_s8  ;;  %280 = vrot.lane.b32.xlu0 (!%p214_p8), %v733_v17, %s656_s15  ;;  %v263_v19 = vld [vmem:[%s222_s7 + $0x8] sm:$0xff] (!%p214_p8)  ;;  %v739_v21 = vld [vmem:[%s222_s7 + $0x20] sm:$0xff] (!%p214_p8)  ;;  %v301_v33 = vmul.f32 (!%p214_p8), 0.40261996, %v733_v17 }
  0x26   : > { %v267_v20 = vld [vmem:[%s222_s7 + $0x28] sm:$0xff] (!%p214_p8)  ;;  %v269_v22 = vld [vmem:[%s222_s7 + $0x38] sm:$0xff] (!%p214_p8)  ;;  %v268_v23 = vld [vmem:[%s222_s7 + $0x30] sm:$0xff] (!%p214_p8)  ;;  %v302_v32 = vmul.f32 (!%p214_p8), 0.40261996, %v263_v19 }
  0x27   : > { %v271_v24 = vld [vmem:[%s229_s9 + $0x8] sm:$0xff] (!%p214_p8)  ;;  %v744_v25 = vld [vmem:[%s229_s9] sm:$0xff] (!%p214_p8)  ;;  %v273_v26 = vld [vmem:[%s229_s9 + $0x18] sm:$0xff] (!%p214_p8)  ;;  %v334_v34 = vmul.f32 (!%p214_p8), 0.40261996, %v267_v20 }
  0x28   : > { %v272_v27 = vld [vmem:[%s229_s9 + $0x10] sm:$0xff] (!%p214_p8)  ;;  %v275_v28 = vld [vmem:[%s229_s9 + $0x28] sm:$0xff] (!%p214_p8)  ;;  %v749_v29 = vld [vmem:[%s229_s9 + $0x20] sm:$0xff] (!%p214_p8)  ;;  %v333_v35 = vmul.f32 (!%p214_p8), 0.40261996, %v739_v21 }
  0x29   : > { %293 = vrot.lane.b32.xlu1 %v265_v18, %s655_s8  ;;  %282 = vrot.lane.b32.xlu0 %v263_v19, %s656_s15  ;;  %v277_v30 = vld [vmem:[%s229_s9 + $0x38] sm:$0xff]  ;;  %v276_v31 = vld [vmem:[%s229_s9 + $0x30] sm:$0xff]  ;;  %v366_v36 = vmul.f32 0.40261996, %v271_v24  ;;  %v365_v37 = vmul.f32 0.40261996, %v744_v25 }
  0x2a   : > { %v398_v38 = vmul.f32 0.40261996, %v275_v28  ;;  %v397_v39 = vmul.f32 0.40261996, %v749_v29  ;;  %s814_s11 = smov (!%p255_p9, %s645_s11), 1 }
  0x2b   : > { %s568_s16 = sshll.u32 %s814_s11, 3 }
  0x2c   : > { %s261_s20 = scalar_lea.vmem %s805_s2, %s568_s16 }
  0x2d   : > { %316 = vrot.lane.b32.xlu1 %v267_v20, %s656_s15  ;;  %314 = vrot.lane.b32.xlu0 %v739_v21, %s656_s15 }
  0x31   : > { %326 = vrot.lane.b32.xlu1 %v269_v22, %s655_s8  ;;  %324 = vrot.lane.b32.xlu0 %v268_v23, %s655_s8 }
  0x35   : > { %348 = vrot.lane.b32.xlu1 %v271_v24, %s656_s15  ;;  %346 = vrot.lane.b32.xlu0 %v744_v25, %s656_s15 }
  0x39   : > { %358 = vrot.lane.b32.xlu1 %v273_v26, %s655_s8  ;;  %356 = vrot.lane.b32.xlu0 %v272_v27, %s655_s8 }
  0x3d   : > { %380 = vrot.lane.b32.xlu1 %v275_v28, %s656_s15  ;;  %378 = vrot.lane.b32.xlu0 %v749_v29, %s656_s15 }
  0x41   : > { %390 = vrot.lane.b32.xlu1 %v277_v30, %s655_s8  ;;  %388 = vrot.lane.b32.xlu0 %v276_v31, %s655_s8 }
  0x45   : > { %307 = vrot.lane.b32.xlu1 %v302_v32, %s655_s8  ;;  %305 = vrot.lane.b32.xlu0 %v301_v33, %s655_s8 }
  0x49   : > { %339 = vrot.lane.b32.xlu1 %v334_v34, %s655_s8  ;;  %337 = vrot.lane.b32.xlu0 %v333_v35, %s655_s8 }
  0x4d   : > { %371 = vrot.lane.b32.xlu1 %v366_v36, %s655_s8  ;;  %369 = vrot.lane.b32.xlu0 %v365_v37, %s655_s8 }
  0x51   : > { %403 = vrot.lane.b32.xlu1 %v398_v38, %s655_s8  ;;  %401 = vrot.lane.b32.xlu0 %v397_v39, %s655_s8 }
  0x97   : > { %v292_v40 = vpop.permute.xlu1 %291  ;;  %v281_v41 = vpop.permute.xlu0 %280 }
  0x9b   : > { %v294_v42 = vpop.permute.xlu1 %293  ;;  %v283_v43 = vpop.permute.xlu0 %282 }
  0x9c   : > { %v296_v52 = vsel %vm295_vm0, %v292_v40, %v294_v42  ;;  %v285_v53 = vsel %vm284_vm1, %v281_v41, %v283_v43 }
  0x9d   : > { %v298_v54 = vadd.f32 %v296_v52, %v731_v16  ;;  %v287_v55 = vadd.f32 %v285_v53, %v733_v17 }
  0x9f   : > { %v317_v44 = vpop.permute.xlu1 %316  ;;  %v315_v45 = vpop.permute.xlu0 %314  ;;  %v299_v60 = vmul.f32 0.24420136, %v298_v54  ;;  %v288_v61 = vmul.f32 0.05448869, %v287_v55 }
  0xa0   : > { %v318_v59 = vsel %vm284_vm1, %v315_v45, %v317_v44 }
  0xa1   : > { %v320_v2 = vadd.f32 %v318_v59, %v739_v21  ;;  %v300_v7 = vadd.f32 %v299_v60, %v288_v61 }
  0xa3   : > { %v327_v46 = vpop.permute.xlu1 %326  ;;  %v325_v47 = vpop.permute.xlu0 %324  ;;  %v321_v11 = vmul.f32 0.05448869, %v320_v2 }
  0xa4   : > { %v328_v58 = vsel %vm295_vm0, %v325_v47, %v327_v46 }
  0xa5   : > { %v330_v62 = vadd.f32 %v328_v58, %v268_v23 }
  0xa7   : > { %v349_v48 = vpop.permute.xlu1 %348  ;;  %v347_v49 = vpop.permute.xlu0 %346  ;;  %v331_v4 = vmul.f32 0.24420136, %v330_v62 }
  0xa8   : > { %v350_v3 = vsel %vm284_vm1, %v347_v49, %v349_v48 }
  0xa9   : > { %v352_v12 = vadd.f32 %v350_v3, %v744_v25  ;;  %v332_v19 = vadd.f32 %v331_v4, %v321_v11 }
  0xab   : > { %v359_v50 = vpop.permute.xlu1 %358  ;;  %v357_v51 = vpop.permute.xlu0 %356  ;;  %v353_v22 = vmul.f32 0.05448869, %v352_v12 }
  0xac   : > { %v360_v1 = vsel %vm295_vm0, %v357_v51, %v359_v50 }
  0xad   : > { %v362_v5 = vadd.f32 %v360_v1, %v272_v27 }
  0xaf   : > { %v381_v56 = vpop.permute.xlu1 %380  ;;  %v379_v57 = vpop.permute.xlu0 %378  ;;  %v363_v15 = vmul.f32 0.24420136, %v362_v5 }
  0xb0   : > { %v382_v14 = vsel %vm284_vm1, %v379_v57, %v381_v56 }
  0xb1   : > { %v384_v23 = vadd.f32 %v382_v14, %v749_v29  ;;  %v364_v30 = vadd.f32 %v363_v15, %v353_v22 }
  0xb3   : > { %v391_v63 = vpop.permute.xlu1 %390  ;;  %v389_v0 = vpop.permute.xlu0 %388  ;;  %v385_v33 = vmul.f32 0.05448869, %v384_v23 }
  0xb4   : > { %v392_v9 = vsel %vm295_vm0, %v389_v0, %v391_v63 }
  0xb5   : > { %v394_v16 = vadd.f32 %v392_v9, %v276_v31 }
  0xb7   : > { %v308_v6 = vpop.permute.xlu1 %307  ;;  %v306_v8 = vpop.permute.xlu0 %305  ;;  %v395_v26 = vmul.f32 0.24420136, %v394_v16 }
  0xb8   : > { %v309_v10 = vsel %vm295_vm0, %v306_v8, %v308_v6 }
  0xb9   : > { %v311_v13 = vadd.f32 %v309_v10, %v300_v7  ;;  %v396_v29 = vadd.f32 %v395_v26, %v385_v33 }
  0xbb   : > { %v409_v17 = vrot.slane %v311_v13, 2  ;;  %v340_v18 = vpop.permute.xlu1 %339  ;;  %v338_v20 = vpop.permute.xlu0 %337  ;;  %v419_v34 = vmul.f32 0.40261996, %v311_v13 }
  0xbc   : > { %v341_v21 = vsel %vm295_vm0, %v338_v20, %v340_v18 }
  0xbd   : > { %v343_v24 = vadd.f32 %v341_v21, %v332_v19  ;;  %v411_v27 = vadd.f32 %v409_v17, %v311_v13  ;;  %v421_v43 = vrot.slane %v419_v34, 1 }
  0xbf   : > { %v414_v25 = vrot.slane %v343_v24, 1  ;;  %v372_v28 = vpop.permute.xlu1 %371  ;;  %v370_v32 = vpop.permute.xlu0 %369  ;;  %v412_v37 = vmul.f32 0.05448869, %v411_v27 }
  0xc0   : > { %v373_v31 = vsel %vm295_vm0, %v370_v32, %v372_v28 }
  0xc1   : > { %v416_v35 = vadd.f32 %v414_v25, %v343_v24  ;;  %v375_v36 = vadd.f32 %v373_v31, %v364_v30 }
  0xc3   : > { %v417_v38 = vmul.f32 0.24420136, %v416_v35  ;;  %v425_v39 = vrot.slane %v375_v36, 2  ;;  %v404_v40 = vpop.permute.xlu1 %403  ;;  %v402_v41 = vpop.permute.xlu0 %401  ;;  %v437_v51 = vmul.f32 0.40261996, %v375_v36 }
  0xc4   : > { %v405_v42 = vsel %vm295_vm0, %v402_v41, %v404_v40 }
  0xc5   : > { %v418_v44 = vadd.f32 %v417_v38, %v412_v37  ;;  %v427_v45 = vadd.f32 %v425_v39, %v311_v13  ;;  %v407_v46 = vadd.f32 %v405_v42, %v396_v29  ;;  %v439_v55 = vrot.slane %v437_v51, 1 }
  0xc7   : > { %v423_v47 = vadd.f32 %v421_v43, %v418_v44  ;;  %v428_v48 = vmul.f32 0.05448869, %v427_v45  ;;  %v432_v49 = vrot.slane %v407_v46, 1 }
  0xc9   : > { %442 = vst [vmem:[%s261_s20] sm:$0x3f] %v423_v47  ;;  %v429_v50 = vadd.f32 %v428_v48, %v417_v38  ;;  %v434_v52 = vadd.f32 %v432_v49, %v343_v24 }
  0xcb   : > { %v430_v53 = vadd.f32 %v429_v50, %v421_v43  ;;  %v435_v54 = vmul.f32 0.24420136, %v434_v52 }
  0xcd   : > { %443 = vst [vmem:[%s261_s20] sm:$0x40] %v430_v53  ;;  %v436_v56 = vadd.f32 %v435_v54, %v428_v48 }
  0xcf   : > { %v441_v57 = vadd.f32 %v439_v55, %v436_v56 }
  0xd1   : > { %444 = vst [vmem:[%s261_s20] sm:$0x80] %v441_v57 }
  0xd2 PF: > { %s12_s13 = sadd.s32 1, %s653_s13   ;;  %s807_s9 = smov %s641_s10 }
  0xd3   : > { %p9_p10 = scmp.ge.s32.totalorder %s12_s13, 4   ;;  %s808_s10 = smov %s711_s18 }
  0xd4   : > { %s809_s11 = smov %s649_s12  ;;  %s810_s12 = smov %s812_s14 }
  0xd5   :  { %11 = sbr.rel (!%p9_p10) target bundleno = 3 (0x3), region = 117 }

</bundles_post_ra>
